<compile_context>
chip_gen: v7x
topology: tpu7x:2x2x1
jax: 0.10.0
libtpu: 0.0.40
codegen_flags: <defaults>
</compile_context>

<pallas_src>
import functools

import jax
import jax.numpy as jnp
from jax import lax
from jax.experimental import pallas as pl
from jax.experimental.pallas import tpu as pltpu


def _gdn1d_kernel(x_ref, gamma_ref, beta_ref, o_ref):
    # x tile: (TM, C_pad);  gamma: (C_pad, C_pad);  beta: (1, C_pad)
    x = x_ref[...]
    x2 = x * x                                   # native dtype -> MXU operand
    denom = jnp.dot(x2, gamma_ref[...], preferred_element_type=jnp.float32)
    denom = denom + beta_ref[...].astype(jnp.float32)   # broadcast (1, C_pad)
    y = x.astype(jnp.float32) * lax.rsqrt(denom)
    o_ref[...] = y.astype(o_ref.dtype)


def _round_up(v, m):
    return ((v + m - 1) // m) * m


@functools.partial(jax.jit, static_argnames=("block_rows",))
def gdn1d(x, gamma, beta, *, block_rows=512):
    """Pallas implementation of Gdn1d forward: y = x / sqrt(x^2 @ gamma + beta).

    Args:
      x:     (N, C) input.
      gamma: (C, C) parameter.
      beta:  (C,)   parameter.
    Returns:
      y: (N, C)
    """
    N, C = x.shape

    # Lane-dense channel padding (last dim multiple of 128).
    C_pad = _round_up(C, 128)
    # Row tile: multiple of 8 sublanes, capped so double-buffered tiles fit
    # comfortably in scoped VMEM on every generation (incl. v7x's 64 MiB).
    TM = min(block_rows, _round_up(N, 8))
    N_pad = _round_up(N, TM)

    x_p = jnp.pad(x, ((0, N_pad - N), (0, C_pad - C)))
    gamma_p = jnp.pad(gamma, ((0, C_pad - C), (0, C_pad - C)))
    # Pad beta with 1.0 so the denominator stays strictly positive in pad lanes
    # (their outputs are discarded, but this keeps rsqrt NaN-free).
    beta_p = jnp.pad(beta, (0, C_pad - C), constant_values=1.0).reshape(1, C_pad)

    grid = (N_pad // TM,)

    # NOTE: for very large C (>= ~2048) gamma alone approaches the VMEM budget;
    # a K-tiled accumulation over channel blocks would be needed there.  For
    # typical GDN channel counts the resident (C_pad, C_pad) block is fine.
    out_p = pl.pallas_call(
        _gdn1d_kernel,
        out_shape=jax.ShapeDtypeStruct((N_pad, C_pad), x.dtype),
        grid=grid,
        in_specs=[
            pl.BlockSpec((TM, C_pad), lambda i: (i, 0)),      # x row tile
            pl.BlockSpec((C_pad, C_pad), lambda i: (0, 0)),   # gamma (resident)
            pl.BlockSpec((1, C_pad), lambda i: (0, 0)),       # beta row (resident)
        ],
        out_specs=pl.BlockSpec((TM, C_pad), lambda i: (i, 0)),
        compiler_params=pltpu.CompilerParams(
            dimension_semantics=("parallel",)),
        cost_estimate=pl.CostEstimate(
            flops=2 * N * C * C + 3 * N * C,
            transcendentals=N * C,
            bytes_accessed=(2 * N * C + C * C + C) * x.dtype.itemsize),
    )(x_p, gamma_p, beta_p)

    return out_p[:N, :C]


if __name__ == "__main__":
    key = jax.random.PRNGKey(0)
    k_x, k_g, k_b = jax.random.split(key, 3)

    N, C = 8, 32  # small batch of "1d" feature vectors with C channels

    x = jax.random.normal(k_x, (N, C), dtype=jnp.float32)
    # gamma: (C, C), beta: (C,).  Keep denominator strictly positive so the
    # sqrt is well-defined (typical GDN parameterization).
    gamma = 0.1 * jnp.abs(jax.random.normal(k_g, (C, C), dtype=jnp.float32)) + 0.01
    beta = jnp.abs(jax.random.normal(k_b, (C,), dtype=jnp.float32)) + 1.0

    y = gdn1d(x, gamma, beta)
    y = jax.block_until_ready(y)

    # Reference check in plain JAX (same math as the PyTorch forward).
    y_ref = x / jnp.sqrt((x * x) @ gamma + beta[None, :])
    assert y.shape == y_ref.shape, "shape mismatch vs reference"
    assert jnp.allclose(y, y_ref, atol=1e-5, rtol=1e-5), "mismatch vs reference"

    print("KERNEL_OK")
</pallas_src>

<mosaic_0001>
module attributes {stable_mosaic.version = 11 : i64} {
  func.func @_gdn1d_kernel(%arg0: i32, %arg1: memref<8x128xf32, #tpu.memory_space<vmem>>, %arg2: memref<128x128xf32, #tpu.memory_space<vmem>>, %arg3: memref<1x128xf32, #tpu.memory_space<vmem>>, %arg4: memref<8x128xf32, #tpu.memory_space<vmem>>) attributes {dimension_semantics = [#tpu.dimension_semantics<parallel>], iteration_bounds = array<i64: 1>, scalar_prefetch = 0 : i64, scratch_operands = 0 : i64, tpu.core_type = #tpu.core_type<tc>, window_params = [{transform_indices = @transform_0, window_bounds = array<i64: 8, 128>}, {pipeline_mode = #tpu.pipeline_mode<synchronous>, transform_indices = @transform_1, window_bounds = array<i64: 128, 128>}, {pipeline_mode = #tpu.pipeline_mode<synchronous>, transform_indices = @transform_2, window_bounds = array<i64: 1, 128>}, {transform_indices = @transform_3, window_bounds = array<i64: 8, 128>}]} {
    %c0 = arith.constant 0 : index
    %c0_0 = arith.constant 0 : index
    %0 = vector.load %arg1[%c0, %c0_0] : memref<8x128xf32, #tpu.memory_space<vmem>>, vector<8x128xf32>
    %1 = arith.mulf %0, %0 : vector<8x128xf32>
    %c0_1 = arith.constant 0 : index
    %c0_2 = arith.constant 0 : index
    %2 = vector.load %arg2[%c0_1, %c0_2] : memref<128x128xf32, #tpu.memory_space<vmem>>, vector<128x128xf32>
    %cst = arith.constant dense<0.000000e+00> : vector<8x128xf32>
    %3 = tpu.matmul %1, %2, %cst {dimension_numbers = #tpu.dot_dimension_numbers<[1], [0], [0], [1], [0, 0, 1, 1], [], []>} : vector<8x128xf32>, vector<128x128xf32>, vector<8x128xf32> -> vector<8x128xf32>
    %c0_3 = arith.constant 0 : index
    %c0_4 = arith.constant 0 : index
    %4 = vector.load %arg3[%c0_3, %c0_4] : memref<1x128xf32, #tpu.memory_space<vmem>>, vector<1x128xf32>
    %5 = vector.broadcast %4 : vector<1x128xf32> to vector<8x128xf32>
    %6 = arith.addf %3, %5 : vector<8x128xf32>
    %7 = math.rsqrt %6 : vector<8x128xf32>
    %8 = arith.mulf %0, %7 : vector<8x128xf32>
    %c0_5 = arith.constant 0 : index
    %c0_6 = arith.constant 0 : index
    %9 = vector.load %arg4[%c0_5, %c0_6] : memref<8x128xf32, #tpu.memory_space<vmem>>, vector<8x128xf32>
    tpu.vector_store %arg4[%c0_5, %c0_6], %8 {strides = array<i32>} : memref<8x128xf32, #tpu.memory_space<vmem>>, vector<8x128xf32>,
    return
  }
  func.func @transform_0(%arg0: i32) -> (i32, i32) {
    %c0_i32 = arith.constant 0 : i32
    %c0_i32_0 = arith.constant 0 : i32
    return %arg0, %c0_i32 : i32, i32
  }
  func.func @transform_1(%arg0: i32) -> (i32, i32) {
    %c0_i32 = arith.constant 0 : i32
    %c0_i32_0 = arith.constant 0 : i32
    %c0_i32_1 = arith.constant 0 : i32
    return %c0_i32, %c0_i32_0 : i32, i32
  }
  func.func @transform_2(%arg0: i32) -> (i32, i32) {
    %c0_i32 = arith.constant 0 : i32
    %c0_i32_0 = arith.constant 0 : i32
    %c0_i32_1 = arith.constant 0 : i32
    return %c0_i32, %c0_i32_0 : i32, i32
  }
  func.func @transform_3(%arg0: i32) -> (i32, i32) {
    %c0_i32 = arith.constant 0 : i32
    %c0_i32_0 = arith.constant 0 : i32
    return %arg0, %c0_i32 : i32, i32
  }
}

</mosaic_0001>

<bundles_post_ra>
// kernel: gdn1d.1
= control target key start
LH: loop header
LB: loop body
LE: loop exit
PB: predicated region body
PF: predicated region fallthrough
CT: control target
= control target key end

     0   :  { %v234_v3 = vmov 0.0|0.0   ;;  %vm235_vm0 = vmmov 0   ;;  %v236_v6 = vmov 0.0   ;;  %s324_s0 = inlined_call_operand.vmem [shape: f32[8,128], index: 0, kind: input, shape index: {}]   ;;  %s325_s1 = inlined_call_operand.vmem [shape: f32[128,128], index: 1, kind: input, shape index: {}]   ;;  %s326_s2 = inlined_call_operand.vmem [shape: f32[1,128], index: 2, kind: input, shape index: {}]   ;;  %s327_s3 = inlined_call_operand.hbm [shape: f32[8,128], index: 3, kind: output, shape index: {}]  }
   0x1   :  { %v17_v0 = vld [vmem:[%s325_s1] sm:$0xff]  ;;  %v18_v1 = vld [vmem:[%s325_s1 + $0x8] sm:$0xff]  ;;  %v19_v2 = vld [vmem:[%s325_s1 + $0x10] sm:$0xff]  ;;  %180 = vmatprep.subr.bf16.mxu0 %v234_v3  ;;  %177 = vmatprep.mubr.msk.f32.mxu0 %vm235_vm0, %v236_v6 }
   0x2   :  { %v181_v4 = vpack.c.bf16 %v18_v1, %v17_v0  ;;  %v20_v5 = vld [vmem:[%s325_s1 + $0x18] sm:$0xff]  ;;  %v21_v8 = vld [vmem:[%s325_s1 + $0x20] sm:$0xff]  ;;  %v22_v9 = vld [vmem:[%s325_s1 + $0x28] sm:$0xff] }
   0x3   :  { %v184_v7 = vpack.c.bf16 %v20_v5, %v19_v2 }
   0x4   :  { %182 = vmatpush3.bf16.msra.mxu0 %v181_v4 }
   0x5   :  { %183 = vmatprep.subr.bf16.mxu0 %v234_v3 }
   0x6   :  { %8 = vsyncpa [#allocation3], 0  ;;  %v187_v10 = vpack.c.bf16 %v22_v9, %v21_v8  ;;  %v23_v11 = vld [vmem:[%s325_s1 + $0x30] sm:$0xff]  ;;  %v24_v12 = vld [vmem:[%s325_s1 + $0x38] sm:$0xff]  ;;  %s237_s21 = smov [#allocation2]  }
   0x7   :  { %v190_v13 = vpack.c.bf16 %v24_v12, %v23_v11  ;;  %v25_v14 = vld [vmem:[%s325_s1 + $0x40] sm:$0xff]  ;;  %v26_v15 = vld [vmem:[%s325_s1 + $0x48] sm:$0xff]  ;;  %v27_v17 = vld [vmem:[%s325_s1 + $0x50] sm:$0xff] }
   0x8   :  { %185 = vmatpush3.bf16.msra.mxu0 %v184_v7  ;;  %v193_v16 = vpack.c.bf16 %v26_v15, %v25_v14  ;;  %v28_v18 = vld [vmem:[%s325_s1 + $0x58] sm:$0xff]  ;;  %v29_v20 = vld [vmem:[%s325_s1 + $0x60] sm:$0xff]  ;;  %v30_v21 = vld [vmem:[%s325_s1 + $0x68] sm:$0xff] }
   0x9   :  { %186 = vmatprep.subr.bf16.mxu0 %v234_v3  ;;  %v196_v19 = vpack.c.bf16 %v28_v18, %v27_v17  ;;  %v199_v22 = vpack.c.bf16 %v30_v21, %v29_v20  ;;  %v31_v23 = vld [vmem:[%s325_s1 + $0x70] sm:$0xff]  ;;  %v32_v24 = vld [vmem:[%s325_s1 + $0x78] sm:$0xff]  ;;  %v15_v26 = vld [vmem:[%s324_s0] sm:$0xff]  ;;  %s119_s1 = sshll.u32 %s237_s21, 4  ;;  %s120_s1 = int_to_ptr.vmem [resolvable:$true] %s119_s1 }
   0xa   :  { %v202_v25 = vpack.c.bf16 %v32_v24, %v31_v23  ;;  %v16_v27 = vmul.f32 %v15_v26, %v15_v26  ;;  %v127_v28 = vld [vmem:[%s326_s2] ss:$0 sm:$0xff]  ;;  %s210_s22 = scalar_lea.vmem %s120_s1, 128  ;;  %p215_p1 = scmp.lt.s32.totalorder %s120_s1, %s120_s1 }
   0xb   :  { %p211_p0 = scmp.ne.s32.totalorder %s120_s1, %s210_s22  ;;  %p216_p2 = scmp.lt.s32.totalorder %s210_s22, %s210_s22 }
   0xc   :  { %188 = vmatpush3.bf16.msra.mxu0 %v187_v10 }
   0xd   :  { %189 = vmatprep.subr.bf16.mxu0 %v234_v3  ;;  %p217_p3 = por %p216_p2, %p215_p1 }
   0xf   :  { %p218_p4 = pnand %p217_p3, %p211_p0 }
  0x10   :  { %191 = vmatpush3.bf16.msra.mxu0 %v190_v13 }
  0x11   :  { %192 = vmatprep.subr.bf16.mxu0 %v234_v3 }
  0x14   :  { %194 = vmatpush3.bf16.msra.mxu0 %v193_v16 }
  0x15   :  { %195 = vmatprep.subr.bf16.mxu0 %v234_v3 }
  0x18   :  { %197 = vmatpush3.bf16.msra.mxu0 %v196_v19 }
  0x19   :  { %198 = vmatprep.subr.bf16.mxu0 %v234_v3 }
  0x1c   :  { %200 = vmatpush3.bf16.msra.mxu0 %v199_v22 }
  0x1d   :  { %201 = vmatprep.subr.bf16.mxu0 %v234_v3 }
  0x20   :  { %203 = vmatpush3.bf16.msra.mxu0 %v202_v25 }
  0x23   :  { %178 = vmatmul.mubr.f32.vlgmr.msra.gmra.mrb[0].mxu0 %v16_v27 }
  0xf6   :  { %v106_v29 = vpop.f32.mrb[0].mxu0 }
  0xf7   :  { %v107_v30 = vadd.f32 %v127_v28, %v106_v29  ;;  %v179_v31 = vpop.f32.mrb[1].mxu0 }
  0xf9   :  { %208 = vrsqrt.f32 %v107_v30 }
 0x103   :  { %v209_v32 = vpop.eup %208 }
 0x104   :  { %v111_v33 = vmul.f32 %v209_v32, %v15_v26 }
 0x106   :  { %112 = vst [vmem:[#allocation2] sm:$0xff] %v111_v33 }
 0x107   :  { %221 = shalt.err (!%p218_p4)
}
 0x108   :  { %s222_s2 = scalar_lea.hbm %s327_s3, 128 }
 0x109   :  { %p223_p5 = scmp.ne.s32.totalorder %s327_s3, %s222_s2  ;;  %p226_p6 = scmp.lt.u32.totalorder %s222_s2, %s327_s3 }
 0x10b   :  { %p228_p7 = pnand %p226_p6, %p223_p5 }
 0x10d   :  { %231 = shalt.err (!%p228_p7)
}
 0x10e   :  { %122 = dma.vmem_to_hbm [thread:$0]  %s120_s1, 128, %s327_s3, [#allocation3]  }
 0x10f   :  { %232 = dma.done.wait [#allocation3], 128  }
 0x110   :  { %233 = vsyncadd [#allocation3], 4294967168 }
 0x111   :  { %126 = vsyncpa [#allocation3], 1 }

</bundles_post_ra>
